<compile_context>
chip_gen: v6e
topology: v6e:2x2x1
jax: 0.10.0
libtpu: 0.0.40
codegen_flags: <defaults>
</compile_context>

<pallas_src>
import math
import functools

import jax
import jax.numpy as jnp
from jax.experimental import pallas as pl
from jax.experimental.pallas import tpu as pltpu

T_0 = 227.13
TEMP_OFF = 273.15 - T_0                 # folded: temp + 273.15 - T_0
TWO_PI_OVER_365 = 2.0 * math.pi / 365.0
HALF_PI = math.pi / 2.0

LANES = 128                             # lane width (last dim)
MAX_TILE_ROWS = 1024                    # sublane rows per grid step


def _respiration_kernel(Tr, Pl,
                        treat_ref, plot_ref, day_ref, temp_ref, m_ref,
                        A_ref, neg_ea_ref, a_ref, b_ref, amp_ref, phoff_ref,
                        out_ref):
    """Elementwise hot path; Tr/Pl-indexed params gathered via select-sum."""
    treat = treat_ref[...]
    plot = plot_ref[...]
    day = day_ref[...]
    temp = temp_ref[...]
    M = m_ref[...]

    # (treatment - 1).long() / (plot_id - 1).long() equivalents (trunc cast).
    tr = (treat - 1.0).astype(jnp.int32)
    pli = (plot - 1.0).astype(jnp.int32)

    zero = jnp.zeros_like(M)

    # Per-treatment parameter gather (Tr is tiny -> static select-sum).
    # NOTE: out-of-range indices silently yield 0 (PyTorch would raise).
    a_g = zero
    b_g = zero
    neg_ea_g = zero
    amp_g = zero
    ph_g = zero
    for t in range(Tr):
        sel = tr == t
        a_g = jnp.where(sel, a_ref[t], a_g)
        b_g = jnp.where(sel, b_ref[t], b_g)
        neg_ea_g = jnp.where(sel, neg_ea_ref[t], neg_ea_g)
        amp_g = jnp.where(sel, amp_ref[t], amp_g)
        ph_g = jnp.where(sel, phoff_ref[t], ph_g)

    # Per-plot amplitude A (Pl is tiny).
    A_g = zero
    for p in range(Pl):
        A_g = jnp.where(pli == p, A_ref[p], A_g)

    # xi_moist = a[tr] * M - b[tr] * M^2
    xi_moist = a_g * M - b_g * (M * M)
    # xi_temp = A[pl] * exp(-Ea[tr] / (temp + 273.15 - T_0))   (Ea pre-negated)
    xi_temp = A_g * jnp.exp(neg_ea_g / (temp + TEMP_OFF))
    # sine_wave = amplitude[tr] * cos(2pi/365*day + phase_off[tr])
    sine_wave = amp_g * jnp.cos(TWO_PI_OVER_365 * day + ph_g)

    out_ref[...] = sine_wave + xi_temp * xi_moist


def respiration_model_forward(treatment, plot_id, day_year, temp, resp, M,
                              A, Ea, a, b, amplitude, peak_day,
                              *, max_tile_rows=MAX_TILE_ROWS):
    """Pallas implementation of RespirationModel.forward (returns model_resp)."""
    del resp  # only consumed by the (non-returned) 'obs' likelihood statement
    N = int(treatment.shape[0])
    Tr = int(Ea.shape[0])
    Pl = int(A.shape[0])

    # Lane-dense 2-D view: (rows, 128). Reshape of a contiguous column is free;
    # pad only when N is not a multiple of 128.
    rows = (N + LANES - 1) // LANES
    n_lane_pad = rows * LANES

    def prep(x):
        x = x.astype(jnp.float32)
        if n_lane_pad != N:
            x = jnp.pad(x, (0, n_lane_pad - N))
        return x.reshape(rows, LANES)

    treat2 = prep(treatment)
    plot2 = prep(plot_id)
    day2 = prep(day_year)
    temp2 = prep(temp)
    m2 = prep(M)

    # Row tile: as large as comfortably fits VMEM (6 f32 streams double
    # buffered at 1024 rows ~= 6 MiB).  Small problems: one full block.
    # Large problems: multi-step parallel grid; ragged last block is fine.
    if rows <= max_tile_rows:
        tile_r = rows
        grid = (1,)
    else:
        tile_r = max_tile_rows                     # multiple of 8
        grid = ((rows + tile_r - 1) // tile_r,)

    data_spec = pl.BlockSpec((tile_r, LANES), lambda i: (i, 0))
    smem_spec = pl.BlockSpec(memory_space=pltpu.SMEM)

    # Pre-fold the tiny per-treatment vectors (removes VPU work per vreg).
    neg_ea = -Ea.astype(jnp.float32)
    phase_off = (TWO_PI_OVER_365 * (peak_day.astype(jnp.float32) - 1.0)
                 - HALF_PI)

    kernel = functools.partial(_respiration_kernel, Tr, Pl)

    out2 = pl.pallas_call(
        kernel,
        out_shape=jax.ShapeDtypeStruct((rows, LANES), jnp.float32),
        grid_spec=pltpu.PrefetchScalarGridSpec(
            num_scalar_prefetch=0,
            grid=grid,
            in_specs=[data_spec, data_spec, data_spec, data_spec, data_spec,
                      smem_spec, smem_spec, smem_spec, smem_spec, smem_spec,
                      smem_spec],
            out_specs=data_spec,
        ),
        compiler_params=pltpu.CompilerParams(
            dimension_semantics=("parallel",)),
    )(treat2, plot2, day2, temp2, m2,
      A.astype(jnp.float32), neg_ea, a.astype(jnp.float32),
      b.astype(jnp.float32), amplitude.astype(jnp.float32), phase_off)

    return out2.reshape(-1)[:N]


def _reference_forward(treatment, plot_id, day_year, temp, M,
                       A, Ea, a, b, amplitude, peak_day):
    tr = (treatment - 1.0).astype(jnp.int32)
    pli = (plot_id - 1.0).astype(jnp.int32)
    xi_moist = a[tr] * M - b[tr] * M ** 2
    xi_temp = A[pli] * jnp.exp(-Ea[tr] / (temp + 273.15 - T_0))
    sine = amplitude[tr] * jnp.cos(
        TWO_PI_OVER_365 * day_year + TWO_PI_OVER_365 * (peak_day[tr] - 1.0)
        - HALF_PI)
    return sine + xi_temp * xi_moist


def _make_inputs(key, N, Tr, Pl):
    k = jax.random.split(key, 12)
    treatment = jax.random.randint(k[0], (N,), 1, Tr + 1).astype(jnp.float32)
    plot_id = jax.random.randint(k[1], (N,), 1, Pl + 1).astype(jnp.float32)
    day_year = jax.random.uniform(k[2], (N,), minval=1.0, maxval=365.0)
    temp = jax.random.uniform(k[3], (N,), minval=-5.0, maxval=30.0)
    M = jax.random.uniform(k[4], (N,), minval=0.05, maxval=0.8)
    resp = jax.random.uniform(k[5], (N,), minval=0.0, maxval=5.0)
    # Deterministic "samples" from the pyro priors (synthetic parameters).
    A = 400.0 + 100.0 * jax.random.normal(k[6], (Pl,))
    Ea = 398.5 + 50.0 * jax.random.normal(k[7], (Tr,))
    a = 3.11 + 0.25 * jax.random.normal(k[8], (Tr,))
    b = 2.42 + 0.25 * jax.random.normal(k[9], (Tr,))
    amplitude = 0.0 + 0.25 * jax.random.normal(k[10], (Tr,))
    peak_day = 196.0 + 50.0 * jax.random.normal(k[11], (Tr,))
    # TODO(synk): sigma / the pyro 'obs' likelihood are inference statements
    # with no effect on the returned tensor; intentionally omitted.
    return (treatment, plot_id, day_year, temp, resp, M,
            A, Ea, a, b, amplitude, peak_day)


if __name__ == "__main__":
    Tr, Pl = 3, 5

    # Small shape consistent with the module (N observation rows of the CSV).
    N_small = 2000
    args = _make_inputs(jax.random.PRNGKey(0), N_small, Tr, Pl)
    model_resp = respiration_model_forward(*args)
    model_resp = jax.block_until_ready(model_resp)

    (treatment, plot_id, day_year, temp, resp, M,
     A, Ea, a, b, amplitude, peak_day) = args
    ref = _reference_forward(treatment, plot_id, day_year, temp, M,
                             A, Ea, a, b, amplitude, peak_day)
    assert model_resp.shape == (N_small,)
    assert jnp.allclose(model_resp, ref, rtol=1e-4, atol=1e-4)

    # Also exercise the tiled multi-block path (grid >= 2, ragged last block).
    N_big = 132072
    args_b = _make_inputs(jax.random.PRNGKey(1), N_big, Tr, Pl)
    out_b = jax.block_until_ready(respiration_model_forward(*args_b))
    (treatment, plot_id, day_year, temp, resp, M,
     A, Ea, a, b, amplitude, peak_day) = args_b
    ref_b = _reference_forward(treatment, plot_id, day_year, temp, M,
                               A, Ea, a, b, amplitude, peak_day)
    assert out_b.shape == (N_big,)
    assert jnp.allclose(out_b, ref_b, rtol=1e-4, atol=1e-4)

    print("KERNEL_OK")
</pallas_src>

<mosaic_0001>
module attributes {stable_mosaic.version = 11 : i64} {
  func.func @_respiration_kernel(%arg0: i32, %arg1: memref<16x128xf32, #tpu.memory_space<vmem>>, %arg2: memref<16x128xf32, #tpu.memory_space<vmem>>, %arg3: memref<16x128xf32, #tpu.memory_space<vmem>>, %arg4: memref<16x128xf32, #tpu.memory_space<vmem>>, %arg5: memref<16x128xf32, #tpu.memory_space<vmem>>, %arg6: memref<5xf32, #tpu.memory_space<smem>>, %arg7: memref<3xf32, #tpu.memory_space<smem>>, %arg8: memref<3xf32, #tpu.memory_space<smem>>, %arg9: memref<3xf32, #tpu.memory_space<smem>>, %arg10: memref<3xf32, #tpu.memory_space<smem>>, %arg11: memref<3xf32, #tpu.memory_space<smem>>, %arg12: memref<16x128xf32, #tpu.memory_space<vmem>>) attributes {dimension_semantics = [#tpu.dimension_semantics<parallel>], iteration_bounds = array<i64: 1>, scalar_prefetch = 0 : i64, scratch_operands = 0 : i64, tpu.core_type = #tpu.core_type<tc>, window_params = [{transform_indices = @transform_0, window_bounds = array<i64: 16, 128>}, {transform_indices = @transform_1, window_bounds = array<i64: 16, 128>}, {transform_indices = @transform_2, window_bounds = array<i64: 16, 128>}, {transform_indices = @transform_3, window_bounds = array<i64: 16, 128>}, {transform_indices = @transform_4, window_bounds = array<i64: 16, 128>}, {transform_indices = @transform_5, window_bounds = array<i64: 5>}, {transform_indices = @transform_6, window_bounds = array<i64: 3>}, {transform_indices = @transform_7, window_bounds = array<i64: 3>}, {transform_indices = @transform_8, window_bounds = array<i64: 3>}, {transform_indices = @transform_9, window_bounds = array<i64: 3>}, {transform_indices = @transform_10, window_bounds = array<i64: 3>}, {transform_indices = @transform_11, window_bounds = array<i64: 16, 128>}]} {
    %c0 = arith.constant 0 : index
    %c0_0 = arith.constant 0 : index
    %0 = vector.load %arg1[%c0, %c0_0] : memref<16x128xf32, #tpu.memory_space<vmem>>, vector<16x128xf32>
    %c0_1 = arith.constant 0 : index
    %c0_2 = arith.constant 0 : index
    %1 = vector.load %arg2[%c0_1, %c0_2] : memref<16x128xf32, #tpu.memory_space<vmem>>, vector<16x128xf32>
    %c0_3 = arith.constant 0 : index
    %c0_4 = arith.constant 0 : index
    %2 = vector.load %arg3[%c0_3, %c0_4] : memref<16x128xf32, #tpu.memory_space<vmem>>, vector<16x128xf32>
    %c0_5 = arith.constant 0 : index
    %c0_6 = arith.constant 0 : index
    %3 = vector.load %arg4[%c0_5, %c0_6] : memref<16x128xf32, #tpu.memory_space<vmem>>, vector<16x128xf32>
    %c0_7 = arith.constant 0 : index
    %c0_8 = arith.constant 0 : index
    %4 = vector.load %arg5[%c0_7, %c0_8] : memref<16x128xf32, #tpu.memory_space<vmem>>, vector<16x128xf32>
    %cst = arith.constant 1.000000e+00 : f32
    %5 = vector.broadcast %cst : f32 to vector<16x128xf32>
    %6 = arith.subf %0, %5 : vector<16x128xf32>
    %7 = arith.fptosi %6 : vector<16x128xf32> to vector<16x128xi32>
    %cst_9 = arith.constant 1.000000e+00 : f32
    %8 = vector.broadcast %cst_9 : f32 to vector<16x128xf32>
    %9 = arith.subf %1, %8 : vector<16x128xf32>
    %10 = arith.fptosi %9 : vector<16x128xf32> to vector<16x128xi32>
    %cst_10 = arith.constant 0.000000e+00 : f32
    %11 = vector.broadcast %cst_10 : f32 to vector<16x128xf32>
    %c0_i32 = arith.constant 0 : i32
    %12 = vector.broadcast %c0_i32 : i32 to vector<16x128xi32>
    %13 = arith.cmpi eq, %7, %12 : vector<16x128xi32>
    %c0_11 = arith.constant 0 : index
    %14 = memref.load %arg8[%c0_11] : memref<3xf32, #tpu.memory_space<smem>>
    %15 = vector.broadcast %14 : f32 to vector<16x128xf32>
    %16 = arith.select %13, %15, %11 : vector<16x128xi1>, vector<16x128xf32>
    %c0_12 = arith.constant 0 : index
    %17 = memref.load %arg9[%c0_12] : memref<3xf32, #tpu.memory_space<smem>>
    %18 = vector.broadcast %17 : f32 to vector<16x128xf32>
    %19 = arith.select %13, %18, %11 : vector<16x128xi1>, vector<16x128xf32>
    %c0_13 = arith.constant 0 : index
    %20 = memref.load %arg7[%c0_13] : memref<3xf32, #tpu.memory_space<smem>>
    %21 = vector.broadcast %20 : f32 to vector<16x128xf32>
    %22 = arith.select %13, %21, %11 : vector<16x128xi1>, vector<16x128xf32>
    %c0_14 = arith.constant 0 : index
    %23 = memref.load %arg10[%c0_14] : memref<3xf32, #tpu.memory_space<smem>>
    %24 = vector.broadcast %23 : f32 to vector<16x128xf32>
    %25 = arith.select %13, %24, %11 : vector<16x128xi1>, vector<16x128xf32>
    %c0_15 = arith.constant 0 : index
    %26 = memref.load %arg11[%c0_15] : memref<3xf32, #tpu.memory_space<smem>>
    %27 = vector.broadcast %26 : f32 to vector<16x128xf32>
    %28 = arith.select %13, %27, %11 : vector<16x128xi1>, vector<16x128xf32>
    %c1_i32 = arith.constant 1 : i32
    %29 = vector.broadcast %c1_i32 : i32 to vector<16x128xi32>
    %30 = arith.cmpi eq, %7, %29 : vector<16x128xi32>
    %c1 = arith.constant 1 : index
    %31 = memref.load %arg8[%c1] : memref<3xf32, #tpu.memory_space<smem>>
    %32 = vector.broadcast %31 : f32 to vector<16x128xf32>
    %33 = arith.select %30, %32, %16 : vector<16x128xi1>, vector<16x128xf32>
    %c1_16 = arith.constant 1 : index
    %34 = memref.load %arg9[%c1_16] : memref<3xf32, #tpu.memory_space<smem>>
    %35 = vector.broadcast %34 : f32 to vector<16x128xf32>
    %36 = arith.select %30, %35, %19 : vector<16x128xi1>, vector<16x128xf32>
    %c1_17 = arith.constant 1 : index
    %37 = memref.load %arg7[%c1_17] : memref<3xf32, #tpu.memory_space<smem>>
    %38 = vector.broadcast %37 : f32 to vector<16x128xf32>
    %39 = arith.select %30, %38, %22 : vector<16x128xi1>, vector<16x128xf32>
    %c1_18 = arith.constant 1 : index
    %40 = memref.load %arg10[%c1_18] : memref<3xf32, #tpu.memory_space<smem>>
    %41 = vector.broadcast %40 : f32 to vector<16x128xf32>
    %42 = arith.select %30, %41, %25 : vector<16x128xi1>, vector<16x128xf32>
    %c1_19 = arith.constant 1 : index
    %43 = memref.load %arg11[%c1_19] : memref<3xf32, #tpu.memory_space<smem>>
    %44 = vector.broadcast %43 : f32 to vector<16x128xf32>
    %45 = arith.select %30, %44, %28 : vector<16x128xi1>, vector<16x128xf32>
    %c2_i32 = arith.constant 2 : i32
    %46 = vector.broadcast %c2_i32 : i32 to vector<16x128xi32>
    %47 = arith.cmpi eq, %7, %46 : vector<16x128xi32>
    %c2 = arith.constant 2 : index
    %48 = memref.load %arg8[%c2] : memref<3xf32, #tpu.memory_space<smem>>
    %49 = vector.broadcast %48 : f32 to vector<16x128xf32>
    %50 = arith.select %47, %49, %33 : vector<16x128xi1>, vector<16x128xf32>
    %c2_20 = arith.constant 2 : index
    %51 = memref.load %arg9[%c2_20] : memref<3xf32, #tpu.memory_space<smem>>
    %52 = vector.broadcast %51 : f32 to vector<16x128xf32>
    %53 = arith.select %47, %52, %36 : vector<16x128xi1>, vector<16x128xf32>
    %c2_21 = arith.constant 2 : index
    %54 = memref.load %arg7[%c2_21] : memref<3xf32, #tpu.memory_space<smem>>
    %55 = vector.broadcast %54 : f32 to vector<16x128xf32>
    %56 = arith.select %47, %55, %39 : vector<16x128xi1>, vector<16x128xf32>
    %c2_22 = arith.constant 2 : index
    %57 = memref.load %arg10[%c2_22] : memref<3xf32, #tpu.memory_space<smem>>
    %58 = vector.broadcast %57 : f32 to vector<16x128xf32>
    %59 = arith.select %47, %58, %42 : vector<16x128xi1>, vector<16x128xf32>
    %c2_23 = arith.constant 2 : index
    %60 = memref.load %arg11[%c2_23] : memref<3xf32, #tpu.memory_space<smem>>
    %61 = vector.broadcast %60 : f32 to vector<16x128xf32>
    %62 = arith.select %47, %61, %45 : vector<16x128xi1>, vector<16x128xf32>
    %c0_i32_24 = arith.constant 0 : i32
    %63 = vector.broadcast %c0_i32_24 : i32 to vector<16x128xi32>
    %64 = arith.cmpi eq, %10, %63 : vector<16x128xi32>
    %c0_25 = arith.constant 0 : index
    %65 = memref.load %arg6[%c0_25] : memref<5xf32, #tpu.memory_space<smem>>
    %66 = vector.broadcast %65 : f32 to vector<16x128xf32>
    %67 = arith.select %64, %66, %11 : vector<16x128xi1>, vector<16x128xf32>
    %c1_i32_26 = arith.constant 1 : i32
    %68 = vector.broadcast %c1_i32_26 : i32 to vector<16x128xi32>
    %69 = arith.cmpi eq, %10, %68 : vector<16x128xi32>
    %c1_27 = arith.constant 1 : index
    %70 = memref.load %arg6[%c1_27] : memref<5xf32, #tpu.memory_space<smem>>
    %71 = vector.broadcast %70 : f32 to vector<16x128xf32>
    %72 = arith.select %69, %71, %67 : vector<16x128xi1>, vector<16x128xf32>
    %c2_i32_28 = arith.constant 2 : i32
    %73 = vector.broadcast %c2_i32_28 : i32 to vector<16x128xi32>
    %74 = arith.cmpi eq, %10, %73 : vector<16x128xi32>
    %c2_29 = arith.constant 2 : index
    %75 = memref.load %arg6[%c2_29] : memref<5xf32, #tpu.memory_space<smem>>
    %76 = vector.broadcast %75 : f32 to vector<16x128xf32>
    %77 = arith.select %74, %76, %72 : vector<16x128xi1>, vector<16x128xf32>
    %c3_i32 = arith.constant 3 : i32
    %78 = vector.broadcast %c3_i32 : i32 to vector<16x128xi32>
    %79 = arith.cmpi eq, %10, %78 : vector<16x128xi32>
    %c3 = arith.constant 3 : index
    %80 = memref.load %arg6[%c3] : memref<5xf32, #tpu.memory_space<smem>>
    %81 = vector.broadcast %80 : f32 to vector<16x128xf32>
    %82 = arith.select %79, %81, %77 : vector<16x128xi1>, vector<16x128xf32>
    %c4_i32 = arith.constant 4 : i32
    %83 = vector.broadcast %c4_i32 : i32 to vector<16x128xi32>
    %84 = arith.cmpi eq, %10, %83 : vector<16x128xi32>
    %c4 = arith.constant 4 : index
    %85 = memref.load %arg6[%c4] : memref<5xf32, #tpu.memory_space<smem>>
    %86 = vector.broadcast %85 : f32 to vector<16x128xf32>
    %87 = arith.select %84, %86, %82 : vector<16x128xi1>, vector<16x128xf32>
    %88 = arith.mulf %50, %4 : vector<16x128xf32>
    %89 = arith.mulf %4, %4 : vector<16x128xf32>
    %90 = arith.mulf %53, %89 : vector<16x128xf32>
    %91 = arith.subf %88, %90 : vector<16x128xf32>
    %cst_30 = arith.constant 4.602000e+01 : f32
    %92 = vector.broadcast %cst_30 : f32 to vector<16x128xf32>
    %93 = arith.addf %3, %92 : vector<16x128xf32>
    %94 = arith.divf %56, %93 : vector<16x128xf32>
    %95 = math.exp %94 : vector<16x128xf32>
    %96 = arith.mulf %87, %95 : vector<16x128xf32>
    %cst_31 = arith.constant 0.017214207 : f32
    %97 = vector.broadcast %cst_31 : f32 to vector<16x128xf32>
    %98 = arith.mulf %97, %2 : vector<16x128xf32>
    %99 = arith.addf %98, %62 : vector<16x128xf32>
    %100 = math.cos %99 : vector<16x128xf32>
    %101 = arith.mulf %59, %100 : vector<16x128xf32>
    %102 = arith.mulf %96, %91 : vector<16x128xf32>
    %103 = arith.addf %101, %102 : vector<16x128xf32>
    %c0_32 = arith.constant 0 : index
    %c0_33 = arith.constant 0 : index
    %104 = vector.load %arg12[%c0_32, %c0_33] : memref<16x128xf32, #tpu.memory_space<vmem>>, vector<16x128xf32>
    tpu.vector_store %arg12[%c0_32, %c0_33], %103 {strides = array<i32>} : memref<16x128xf32, #tpu.memory_space<vmem>>, vector<16x128xf32>,
    return
  }
  func.func @transform_0(%arg0: i32) -> (i32, i32) {
    %c0_i32 = arith.constant 0 : i32
    %c0_i32_0 = arith.constant 0 : i32
    return %arg0, %c0_i32 : i32, i32
  }
  func.func @transform_1(%arg0: i32) -> (i32, i32) {
    %c0_i32 = arith.constant 0 : i32
    %c0_i32_0 = arith.constant 0 : i32
    return %arg0, %c0_i32 : i32, i32
  }
  func.func @transform_2(%arg0: i32) -> (i32, i32) {
    %c0_i32 = arith.constant 0 : i32
    %c0_i32_0 = arith.constant 0 : i32
    return %arg0, %c0_i32 : i32, i32
  }
  func.func @transform_3(%arg0: i32) -> (i32, i32) {
    %c0_i32 = arith.constant 0 : i32
    %c0_i32_0 = arith.constant 0 : i32
    return %arg0, %c0_i32 : i32, i32
  }
  func.func @transform_4(%arg0: i32) -> (i32, i32) {
    %c0_i32 = arith.constant 0 : i32
    %c0_i32_0 = arith.constant 0 : i32
    return %arg0, %c0_i32 : i32, i32
  }
  func.func @transform_5(%arg0: i32) -> i32 {
    %c0_i32 = arith.constant 0 : i32
    %c0_i32_0 = arith.constant 0 : i32
    return %c0_i32 : i32
  }
  func.func @transform_6(%arg0: i32) -> i32 {
    %c0_i32 = arith.constant 0 : i32
    %c0_i32_0 = arith.constant 0 : i32
    return %c0_i32 : i32
  }
  func.func @transform_7(%arg0: i32) -> i32 {
    %c0_i32 = arith.constant 0 : i32
    %c0_i32_0 = arith.constant 0 : i32
    return %c0_i32 : i32
  }
  func.func @transform_8(%arg0: i32) -> i32 {
    %c0_i32 = arith.constant 0 : i32
    %c0_i32_0 = arith.constant 0 : i32
    return %c0_i32 : i32
  }
  func.func @transform_9(%arg0: i32) -> i32 {
    %c0_i32 = arith.constant 0 : i32
    %c0_i32_0 = arith.constant 0 : i32
    return %c0_i32 : i32
  }
  func.func @transform_10(%arg0: i32) -> i32 {
    %c0_i32 = arith.constant 0 : i32
    %c0_i32_0 = arith.constant 0 : i32
    return %c0_i32 : i32
  }
  func.func @transform_11(%arg0: i32) -> (i32, i32) {
    %c0_i32 = arith.constant 0 : i32
    %c0_i32_0 = arith.constant 0 : i32
    return %arg0, %c0_i32 : i32, i32
  }
}

</mosaic_0001>

<bundles_post_ra>
// kernel: tpu_custom_call.1
= control target key start
LH: loop header
LB: loop body
LE: loop exit
PB: predicated region body
PF: predicated region fallthrough
CT: control target
= control target key end

     0   :  { %16 = vsyncpa [#allocation3], 0  ;;  %s1279_s0 = inlined_call_operand.hbm [shape: f32[16,128], index: 0, kind: input, shape index: {}]   ;;  %s1280_s1 = inlined_call_operand.hbm [shape: f32[16,128], index: 1, kind: input, shape index: {}]   ;;  %s1281_s2 = inlined_call_operand.hbm [shape: f32[16,128], index: 2, kind: input, shape index: {}]   ;;  %s1282_s3 = inlined_call_operand.hbm [shape: f32[16,128], index: 3, kind: input, shape index: {}]   ;;  %s1283_s4 = inlined_call_operand.hbm [shape: f32[16,128], index: 4, kind: input, shape index: {}]   ;;  %s1284_s5 = inlined_call_operand.vmem [shape: f32[5], index: 5, kind: input, shape index: {}]   ;;  %s1285_s6 = inlined_call_operand.vmem [shape: f32[3], index: 6, kind: input, shape index: {}]   ;;  %s1286_s7 = inlined_call_operand.vmem [shape: f32[3], index: 7, kind: input, shape index: {}]   ;;  %s1287_s8 = inlined_call_operand.vmem [shape: f32[3], index: 8, kind: input, shape index: {}]   ;;  %s1288_s9 = inlined_call_operand.vmem [shape: f32[3], index: 9, kind: input, shape index: {}]   ;;  %s1289_s10 = inlined_call_operand.vmem [shape: f32[3], index: 10, kind: input, shape index: {}]   ;;  %s1290_s11 = inlined_call_operand.hbm [shape: f32[16,128], index: 11, kind: output, shape index: {}]  }
   0x1   :  { %17 = vsyncpa [#allocation7], 0 }
   0x2   :  { %18 = vsyncpa [#allocation10], 0 }
   0x3   :  { %19 = vsyncpa [#allocation5], 0 }
   0x4   :  { %20 = vsyncpa [#allocation14], 0 }
   0x5   :  { %21 = vsyncpa [#allocation17], 0 }
   0x6   :  { %22 = vsyncpa [#allocation20], 0 }
   0x7   :  { %23 = vsyncpa [#allocation4], 0  ;;  %s839_s17 = smov [#allocation6]   ;;  %s840_s19 = smov [#allocation9]  }
   0x8   :  { %s41_s18 = sshll.u32 %s839_s17, 4  ;;  %s65_s20 = sshll.u32 %s840_s19, 4  ;;  %s42_s18 = int_to_ptr.vmem [resolvable:$true] %s41_s18  ;;  %s66_s20 = int_to_ptr.vmem [resolvable:$true] %s65_s20 }
   0x9   :  { %s639_s21 = scalar_lea.vmem %s42_s18, 256  ;;  %p644_p1 = scmp.lt.s32.totalorder %s42_s18, %s42_s18 }
   0xa   :  { %p640_p0 = scmp.ne.s32.totalorder %s42_s18, %s639_s21  ;;  %p645_p2 = scmp.lt.s32.totalorder %s639_s21, %s639_s21 }
   0xc   :  { %p646_p3 = por %p645_p2, %p644_p1 }
   0xe   :  { %p647_p4 = pnand %p646_p3, %p640_p0 }
  0x10   :  { %650 = shalt.err (!%p647_p4)
}
  0x11   :  { %s841_s22 = smov 128   ;;  %s842_s23 = smov 8  }
  0x12   :  { %47 = dma.hbm_to_vmem [thread:$0]  %s1280_s1, 256, %s42_s18, [#allocation7], %s841_s22, %s841_s22, %s842_s23  }
  0x13   :  { %s659_s26 = scalar_lea.vmem %s66_s20, 256  ;;  %p664_p6 = scmp.lt.s32.totalorder %s66_s20, %s66_s20 }
  0x14   :  { %p660_p5 = scmp.ne.s32.totalorder %s66_s20, %s659_s26  ;;  %p665_p7 = scmp.lt.s32.totalorder %s659_s26, %s659_s26 }
  0x16   :  { %p666_p8 = por %p665_p7, %p664_p6 }
  0x18   :  { %p667_p9 = pnand %p666_p8, %p660_p5 }
  0x1a   :  { %670 = shalt.err (!%p667_p9)
}
  0x1b   :  { %71 = dma.hbm_to_vmem [thread:$0]  %s1282_s3, 256, %s66_s20, [#allocation10], %s841_s22, %s841_s22, %s842_s23  }
  0x1c   :  { %s100_s12 = sshll.u32 %s1285_s6, 4  ;;  %s120_s14 = sshll.u32 %s1287_s8, 4  ;;  %s101_s12 = int_to_ptr.vmem [resolvable:$true] %s100_s12  ;;  %s121_s14 = int_to_ptr.vmem [resolvable:$true] %s120_s14 }
  0x1d   :  { %s671_s15 = scalar_lea.vmem %s101_s12, 16  ;;  %p676_p11 = scmp.lt.s32.totalorder %s101_s12, %s101_s12 }
  0x1e   :  { %p672_p10 = scmp.ne.s32.totalorder %s101_s12, %s671_s15  ;;  %p677_p12 = scmp.lt.s32.totalorder %s671_s15, %s671_s15 }
  0x20   :  { %p678_p13 = por %p677_p12, %p676_p11 }
  0x22   :  { %p679_p0 = pnand %p678_p13, %p672_p10 }
  0x24   :  { %682 = shalt.err (!%p679_p0)
}
  0x25   :  { %s843_s16 = smov [#allocation13]   ;;  %s683_s3 = scalar_lea.vmem %s121_s14, 16 }
  0x26   :  { %103 = dma.vmem_to_smem %s101_s12, 16, %s843_s16, [#allocation14]  }
  0x27   :  { %p684_p1 = scmp.ne.s32.totalorder %s121_s14, %s683_s3  ;;  %p688_p2 = scmp.lt.s32.totalorder %s121_s14, %s121_s14 }
  0x28   :  { %p689_p3 = scmp.lt.s32.totalorder %s683_s3, %s683_s3 }
  0x2a   :  { %p690_p4 = por %p689_p3, %p688_p2 }
  0x2c   :  { %p691_p5 = pnand %p690_p4, %p684_p1 }
  0x2e   :  { %694 = shalt.err (!%p691_p5)
}
  0x2f   :  { %s844_s6 = smov [#allocation16]   ;;  %s845_s8 = smov [#allocation2]  }
  0x30   :  { %123 = dma.vmem_to_smem %s121_s14, 16, %s844_s6, [#allocation17]  }
  0x31   :  { %s29_s17 = sshll.u32 %s845_s8, 4  ;;  %s846_s18 = smov [#allocation8]   ;;  %s30_s17 = int_to_ptr.vmem [resolvable:$true] %s29_s17 }
  0x32   :  { %s53_s19 = sshll.u32 %s846_s18, 4  ;;  %s703_s20 = scalar_lea.vmem %s30_s17, 256  ;;  %s54_s19 = int_to_ptr.vmem [resolvable:$true] %s53_s19 }
  0x33   :  { %p704_p6 = scmp.ne.s32.totalorder %s30_s17, %s703_s20  ;;  %p708_p7 = scmp.lt.s32.totalorder %s30_s17, %s30_s17 }
  0x34   :  { %p709_p8 = scmp.lt.s32.totalorder %s703_s20, %s703_s20 }
  0x36   :  { %p710_p9 = por %p709_p8, %p708_p7 }
  0x38   :  { %p711_p10 = pnand %p710_p9, %p704_p6 }
  0x3a   :  { %714 = shalt.err (!%p711_p10)
}
  0x3b   :  { %35 = dma.hbm_to_vmem [thread:$0]  %s1279_s0, 256, %s30_s17, [#allocation3], %s841_s22, %s841_s22, %s842_s23  }
  0x3c   :  { %s723_s25 = scalar_lea.vmem %s54_s19, 256  ;;  %p728_p12 = scmp.lt.s32.totalorder %s54_s19, %s54_s19 }
  0x3d   :  { %p724_p11 = scmp.ne.s32.totalorder %s54_s19, %s723_s25  ;;  %p729_p13 = scmp.lt.s32.totalorder %s723_s25, %s723_s25 }
  0x3f   :  { %p730_p0 = por %p729_p13, %p728_p12 }
  0x41   :  { %p731_p1 = pnand %p730_p0, %p724_p11 }
  0x43   :  { %734 = shalt.err (!%p731_p1)
}
  0x44   :  { %59 = dma.hbm_to_vmem [thread:$0]  %s1281_s2, 256, %s54_s19, [#allocation7], %s841_s22, %s841_s22, %s842_s23  }
  0x45   :  { %s90_s30 = sshll.u32 %s1284_s5, 4  ;;  %s847_s12 = smov [#allocation11]   ;;  %s91_s30 = int_to_ptr.vmem [resolvable:$true] %s90_s30 }
  0x46   :  { %s77_s0 = sshll.u32 %s847_s12, 4  ;;  %s78_s0 = int_to_ptr.vmem [resolvable:$true] %s77_s0 }
  0x47   :  { %s743_s1 = scalar_lea.vmem %s78_s0, 256  ;;  %p748_p3 = scmp.lt.s32.totalorder %s78_s0, %s78_s0 }
  0x48   :  { %p744_p2 = scmp.ne.s32.totalorder %s78_s0, %s743_s1  ;;  %p749_p4 = scmp.lt.s32.totalorder %s743_s1, %s743_s1 }
  0x4a   :  { %p750_p5 = por %p749_p4, %p748_p3 }
  0x4c   :  { %p751_p6 = pnand %p750_p5, %p744_p2 }
  0x4e   :  { %754 = shalt.err (!%p751_p6)
}
  0x4f   :  { %83 = dma.hbm_to_vmem [thread:$0]  %s1283_s4, 256, %s78_s0, [#allocation10], %s841_s22, %s841_s22, %s842_s23  }
  0x50   :  { %s755_s14 = scalar_lea.vmem %s91_s30, 16  ;;  %p760_p8 = scmp.lt.s32.totalorder %s91_s30, %s91_s30 }
  0x51   :  { %p756_p7 = scmp.ne.s32.totalorder %s91_s30, %s755_s14  ;;  %p761_p9 = scmp.lt.s32.totalorder %s755_s14, %s755_s14 }
  0x53   :  { %p762_p10 = por %p761_p9, %p760_p8 }
  0x55   :  { %p763_p11 = pnand %p762_p10, %p756_p7 }
  0x57   :  { %766 = shalt.err (!%p763_p11)
}
  0x58   :  { %s848_s5 = smov [#allocation12]   ;;  %s110_s3 = sshll.u32 %s1286_s7, 4  ;;  %s111_s3 = int_to_ptr.vmem [resolvable:$true] %s110_s3 }
  0x59   :  { %93 = dma.vmem_to_smem %s91_s30, 16, %s848_s5, [#allocation5]  }
  0x5a   :  { %s130_s17 = sshll.u32 %s1288_s9, 4  ;;  %s767_s18 = scalar_lea.vmem %s111_s3, 16  ;;  %s131_s17 = int_to_ptr.vmem [resolvable:$true] %s130_s17 }
  0x5b   :  { %p768_p12 = scmp.ne.s32.totalorder %s111_s3, %s767_s18  ;;  %p772_p13 = scmp.lt.s32.totalorder %s111_s3, %s111_s3 }
  0x5c   :  { %p773_p0 = scmp.lt.s32.totalorder %s767_s18, %s767_s18 }
  0x5e   :  { %p774_p1 = por %p773_p0, %p772_p13 }
  0x60   :  { %p775_p2 = pnand %p774_p1, %p768_p12 }
  0x62   :  { %778 = shalt.err (!%p775_p2)
}
  0x63   :  { %s849_s4 = smov [#allocation15]   ;;  %s779_s19 = scalar_lea.vmem %s131_s17, 16 }
  0x64   :  { %113 = dma.vmem_to_smem %s111_s3, 16, %s849_s4, [#allocation14]  }
  0x65   :  { %p780_p3 = scmp.ne.s32.totalorder %s131_s17, %s779_s19  ;;  %p784_p4 = scmp.lt.s32.totalorder %s131_s17, %s131_s17 }
  0x66   :  { %p785_p5 = scmp.lt.s32.totalorder %s779_s19, %s779_s19 }
  0x68   :  { %p786_p6 = por %p785_p5, %p784_p4 }
  0x6a   :  { %p787_p7 = pnand %p786_p6, %p780_p3 }
  0x6c   :  { %790 = shalt.err (!%p787_p7)
}
  0x6d   :  { %s850_s7 = smov [#allocation18]   ;;  %s140_s21 = sshll.u32 %s1289_s10, 4  ;;  %s141_s21 = int_to_ptr.vmem [resolvable:$true] %s140_s21 }
  0x6e   :  { %133 = dma.vmem_to_smem %s131_s17, 16, %s850_s7, [#allocation17]  }
  0x6f   :  { %s791_s24 = scalar_lea.vmem %s141_s21, 16  ;;  %p796_p9 = scmp.lt.s32.totalorder %s141_s21, %s141_s21 }
  0x70   :  { %p792_p8 = scmp.ne.s32.totalorder %s141_s21, %s791_s24  ;;  %p797_p10 = scmp.lt.s32.totalorder %s791_s24, %s791_s24 }
  0x72   :  { %p798_p11 = por %p797_p10, %p796_p9 }
  0x74   :  { %p799_p12 = pnand %p798_p11, %p792_p8 }
  0x76   :  { %802 = shalt.err (!%p799_p12)
}
  0x77   :  { %s851_s25 = smov [#allocation19]  }
  0x78   :  { %143 = dma.vmem_to_smem %s141_s21, 16, %s851_s25, [#allocation20]  }
  0x79   :  { %823 = dma.done.wait [#allocation3], 256  }
  0x7a   :  { %824 = vsyncadd [#allocation3], 4294967040 }
  0x7b   :  { %825 = dma.done.wait [#allocation7], 512  }
  0x7c   :  { %826 = vsyncadd [#allocation7], 4294966784 }
  0x7d   :  { %827 = dma.done.wait [#allocation10], 512  }
  0x7e   :  { %828 = vsyncadd [#allocation10], 4294966784 }
  0x7f   :  { %829 = dma.done.wait [#allocation5], 16  }
  0x80   :  { %830 = vsyncadd [#allocation5], 4294967280 }
  0x81   :  { %831 = dma.done.wait [#allocation14], 32  }
  0x82   :  { %832 = vsyncadd [#allocation14], 4294967264 }
  0x83   :  { %833 = dma.done.wait [#allocation17], 32  }
  0x84   :  { %834 = vsyncadd [#allocation17], 4294967264 }
  0x85   :  { %835 = dma.done.wait [#allocation20], 16  }
  0x86   :  { %836 = vsyncadd [#allocation20], 4294967280 }
  0x87   :  { %177 = sfence }
  0x88   :  { %v178_v0 = vld [vmem:[#allocation2] sm:$0xff]  ;;  %v179_v1 = vld [vmem:[#allocation2 + $0x8] sm:$0xff]  ;;  %v180_v2 = vld [vmem:[#allocation6] sm:$0xff]  ;;  %s967_s10 = sld [smem:[#allocation15]]  ;;  %s858_s4 = smov [#allocation21]  }
  0x89   :  { %v181_v3 = vld [vmem:[#allocation6 + $0x8] sm:$0xff]  ;;  %v553_v4 = vadd.f32 -1.0, %v178_v0  ;;  %v554_v5 = vadd.f32 -1.0, %v179_v1  ;;  %v555_v6 = vadd.f32 -1.0, %v180_v2  ;;  %s969_s26 = sld [smem:[#allocation16]]  ;;  %v973_v10 = vld [vmem:[#allocation11] sm:$0xff] }
  0x8a   :  { %v556_v9 = vadd.f32 -1.0, %v181_v3  ;;  %s971_s27 = sld [smem:[#allocation13]]  ;;  %v975_v11 = vld [vmem:[#allocation11 + $0x8] sm:$0xff]  ;;  %v184_v13 = vld [vmem:[#allocation9] sm:$0xff]  ;;  %v185_v14 = vld [vmem:[#allocation9 + $0x8] sm:$0xff]  ;;  %v992_v20 = vmul.f32 %v973_v10, %v973_v10  ;;  %s535_s19 = sshll.u32 %s858_s4, 4  ;;  %s536_s19 = int_to_ptr.vmem [resolvable:$true] %s535_s19 }
  0x8b   :  { %v579_v7 = vtrunc.f32 %v553_v4  ;;  %v581_v8 = vtrunc.f32 %v554_v5  ;;  %v583_v12 = vtrunc.f32 %v555_v6  ;;  %s977_s28 = sld [smem:[#allocation18]]  ;;  %v182_v17 = vld [vmem:[#allocation8] sm:$0xff]  ;;  %v996_v21 = vmul.f32 %v975_v11, %v975_v11  ;;  %v183_v62 = vld [vmem:[#allocation8 + $0x8] sm:$0xff]  ;;  %s803_s7 = scalar_lea.vmem %s536_s19, 256 }
  0x8c   :  { %s983_s29 = sld [smem:[#allocation19]]  ;;  %v585_v18 = vtrunc.f32 %v556_v9  ;;  %v300_v24 = vadd.f32 46.02, %v184_v13  ;;  %v1003_v25 = vadd.f32 46.02, %v185_v14  ;;  %p804_p13 = scmp.ne.s32.totalorder %s536_s19, %s803_s7 }
  0x8d   :  { %v979_v15 = vcvt.f32.s32 %v579_v7  ;;  %v981_v16 = vcvt.f32.s32 %v581_v8  ;;  %s985_s30 = sld [smem:[#allocation15 + $0x1]]  ;;  %v998_v22 = vcvt.f32.s32 %v583_v12  ;;  %v1010_v27 = vmul.f32 0.017214207, %v182_v17  ;;  %p808_p0 = scmp.lt.s32.totalorder %s536_s19, %s536_s19 }
  0x8e   :  { %v199_v19 = vstv %s967_s10  ;;  %s988_s12 = sld [smem:[#allocation16 + $0x1]]  ;;  %v1046_v42 = vcvt.f32.s32 %v585_v18  ;;  %615 = vrcp.f32 %v300_v24  ;;  %v313_v12 = vmul.f32 0.017214207, %v183_v62  ;;  %p809_p1 = scmp.lt.s32.totalorder %s803_s7, %s803_s7 }
  0x8f   :  { %v203_v23 = vstv %s969_s26  ;;  %s1001_s0 = sld [smem:[#allocation13 + $0x1]]  ;;  %vm196_vm0 = vcmp.eq.s32.totalorder %v979_v15, 0  ;;  %vm197_vm1 = vcmp.eq.s32.totalorder %v981_v16, 0  ;;  %vm218_vm2 = vcmp.eq.s32.totalorder %v979_v15, 1 }
  0x90   :  { %v207_v26 = vstv %s971_s27  ;;  %s1008_s1 = sld [smem:[#allocation18 + $0x1]]  ;;  %v200_v28 = vsel %vm196_vm0, %v199_v19, 0.0  ;;  %v201_v29 = vsel %vm197_vm1, %v199_v19, 0.0  ;;  %v204_v31 = vsel %vm196_vm0, %v203_v23, 0.0  ;;  %p810_p2 = por %p809_p1, %p808_p0 }
  0x91   :  { %v211_v30 = vstv %s977_s28  ;;  %s1018_s13 = sld [smem:[#allocation19 + $0x1]]  ;;  %v205_v32 = vsel %vm197_vm1, %v203_v23, 0.0  ;;  %v208_v33 = vsel %vm196_vm0, %v207_v26, 0.0  ;;  %vm219_vm3 = vcmp.eq.s32.totalorder %v981_v16, 1 }
  0x92   :  { %s1027_s2 = sld [smem:[#allocation15 + $0x2]]  ;;  %v209_v34 = vsel %vm197_vm1, %v207_v26, 0.0  ;;  %v212_v35 = vsel %vm196_vm0, %v211_v30, 0.0  ;;  %v213_v36 = vsel %vm197_vm1, %v211_v30, 0.0  ;;  %v215_v38 = vstv %s983_s29  ;;  %p811_p3 = pnand %p810_p2, %p804_p13 }
  0x93   :  { %v221_v37 = vstv %s985_s30  ;;  %s1036_s14 = sld [smem:[#allocation16 + $0x2]]  ;;  %v216_v49 = vsel %vm196_vm0, %v215_v38, 0.0  ;;  %vm240_vm4 = vcmp.eq.s32.totalorder %v979_v15, 2  ;;  %vm241_vm5 = vcmp.eq.s32.totalorder %v981_v16, 2 }
  0x94   :  { %v222_v39 = vsel %vm218_vm2, %v221_v37, %v200_v28  ;;  %v223_v40 = vsel %vm219_vm3, %v221_v37, %v201_v29  ;;  %v225_v41 = vstv %s988_s12  ;;  %s1044_s5 = sld [smem:[#allocation13 + $0x2]]  ;;  %vm262_vm6 = vcmp.eq.s32.totalorder %v998_v22, 0 }
  0x95   :  { %v226_v43 = vsel %vm218_vm2, %v225_v41, %v204_v31  ;;  %v227_v44 = vsel %vm219_vm3, %v225_v41, %v205_v32  ;;  %v229_v45 = vstv %s1001_s0  ;;  %s1053_s15 = sld [smem:[#allocation18 + $0x2]]  ;;  %v217_v54 = vsel %vm197_vm1, %v215_v38, 0.0 }
  0x96   :  { %v230_v46 = vsel %vm218_vm2, %v229_v45, %v208_v33  ;;  %v231_v47 = vsel %vm219_vm3, %v229_v45, %v209_v34  ;;  %v233_v48 = vstv %s1008_s1  ;;  %s1060_s16 = sld [smem:[#allocation19 + $0x2]]  ;;  %vm263_vm7 = vcmp.eq.s32.totalorder %v1046_v42, 0 }
  0x97   :  { %v234_v50 = vsel %vm218_vm2, %v233_v48, %v212_v35  ;;  %v235_v51 = vsel %vm219_vm3, %v233_v48, %v213_v36  ;;  %v237_v52 = vstv %s1018_s13  ;;  %s1069_s3 = sld [smem:[#allocation12]]  ;;  %vm268_vm8 = vcmp.eq.s32.totalorder %v998_v22, 1 }
  0x98   :  { %v243_v53 = vstv %s1027_s2  ;;  %s1075_s6 = sld [smem:[#allocation12 + $0x1]]  ;;  %v238_v58 = vsel %vm218_vm2, %v237_v52, %v216_v49  ;;  %v239_v7 = vsel %vm219_vm3, %v237_v52, %v217_v54  ;;  %vm269_vm9 = vcmp.eq.s32.totalorder %v1046_v42, 1 }
  0x99   :  { %v244_v55 = vsel %vm240_vm4, %v243_v53, %v222_v39  ;;  %v245_v56 = vsel %vm241_vm5, %v243_v53, %v223_v40  ;;  %v247_v57 = vstv %s1036_s14  ;;  %s1091_s8 = sld [smem:[#allocation12 + $0x2]]  ;;  %vm274_vm10 = vcmp.eq.s32.totalorder %v998_v22, 2 }
  0x9a   :  { %v248_v59 = vsel %vm240_vm4, %v247_v57, %v226_v43  ;;  %v249_v60 = vsel %vm241_vm5, %v247_v57, %v227_v44  ;;  %v251_v61 = vstv %s1044_s5  ;;  %v1101_v2 = vmul.f32 %v244_v55, %v973_v10  ;;  %s1123_s17 = sld [smem:[#allocation12 + $0x3]] }
  0x9b   :  { %v252_v63 = vsel %vm240_vm4, %v251_v61, %v230_v46  ;;  %v1097_v0 = vsel %vm241_vm5, %v251_v61, %v231_v47  ;;  %v255_v1 = vstv %s1053_s15  ;;  %v1113_v6 = vmul.f32 %v245_v56, %v975_v11  ;;  %s1141_s18 = sld [smem:[#allocation12 + $0x4]]  ;;  %v616_v16 = vpop.eup %615 }
  0x9c   :  { %v1105_v3 = vsel %vm240_vm4, %v255_v1, %v234_v50  ;;  %v1109_v4 = vsel %vm241_vm5, %v255_v1, %v235_v51  ;;  %v259_v5 = vstv %s1060_s16  ;;  %v1120_v9 = vmul.f32 %v992_v20, %v248_v59 }
  0x9d   :  { %v265_v8 = vstv %s1069_s3  ;;  %v1126_v10 = vmul.f32 %v996_v21, %v249_v60  ;;  %v260_v11 = vsel %vm240_vm4, %v259_v5, %v238_v58  ;;  %v261_v18 = vsel %vm241_vm5, %v259_v5, %v239_v7 }
  0x9e   :  { %v266_v13 = vsel %vm262_vm6, %v265_v8, 0.0  ;;  %v271_v14 = vstv %s1075_s6  ;;  %v298_v17 = vsub.f32 %v1101_v2, %v1120_v9  ;;  %v267_v19 = vsel %vm263_vm7, %v265_v8, 0.0 }
  0x9f   :  { %v299_v20 = vsub.f32 %v1113_v6, %v1126_v10  ;;  %v272_v15 = vsel %vm268_vm8, %v271_v14, %v266_v13  ;;  %v277_v21 = vstv %s1091_s8  ;;  %617 = vrcp.f32 %v1003_v25 }
  0xa0   :  { %v1146_v23 = vadd.f32 %v1010_v27, %v260_v11  ;;  %v273_v24 = vsel %vm269_vm9, %v271_v14, %v267_v19  ;;  %vm275_vm11 = vcmp.eq.s32.totalorder %v1046_v42, 2  ;;  %v1149_v26 = vadd.f32 %v313_v12, %v261_v18 }
  0xa1   :  { %v278_v30 = vsel %vm274_vm10, %v277_v21, %v272_v15  ;;  %vm280_vm12 = vcmp.eq.s32.totalorder %v998_v22, 3  ;;  %vm281_vm13 = vcmp.eq.s32.totalorder %v1046_v42, 3  ;;  %v279_v25 = vsel %vm275_vm11, %v277_v21, %v273_v24 }
  0xa2   :  { %v316_v28 = vand.u32 2147483647, %v1146_v23  ;;  %v319_v29 = vand.u32 2139095040, %v1146_v23  ;;  %v283_v31 = vstv %s1123_s17  ;;  %v303_v27 = vmul.f32 %v616_v16, %v252_v63 }
  0xa3   :  { %v419_v34 = vand.u32 2147483647, %v1149_v26  ;;  %v422_v35 = vand.u32 2139095040, %v1149_v26  ;;  %vm286_vm14 = vcmp.eq.s32.totalorder %v998_v22, 4  ;;  %vm287_vm15 = vcmp.eq.s32.totalorder %v1046_v42, 4 }
  0xa4   :  { %v320_v32 = vshrl.u32 %v319_v29, 23  ;;  %v323_v33 = vand.u32 8388607, %v316_v28  ;;  %v284_v37 = vsel %vm280_vm12, %v283_v31, %v278_v30  ;;  %v285_v38 = vsel %vm281_vm13, %v283_v31, %v279_v25 }
  0xa5   :  { %v289_v39 = vstv %s1141_s18  ;;  %v423_v40 = vshrl.u32 %v422_v35, 23  ;;  %v306_v41 = vmul.f32 1.442695, %v303_v27  ;;  %v1165_v46 = vand.u32 8388607, %v419_v34 }
  0xa6   :  { %v571_v36 = vadd.s32 4294967169, %v320_v32  ;;  %v324_v44 = vor.u32 8388608, %v323_v33  ;;  %v1167_v47 = vsel %vm286_vm14, %v289_v39, %v284_v37  ;;  %v1169_v48 = vsel %vm287_vm15, %v289_v39, %v285_v38 }
  0xa7   :  { %v575_v45 = vadd.s32 4294967169, %v423_v40  ;;  %619 = vpow2.f32 %v306_v41  ;;  %v427_v53 = vor.u32 8388608, %v1165_v46  ;;  %v852_v56 = vmov 683565275  }
  0xa8   :  { %v326_v43 = vadd.s32 1, %v571_v36  ;;  %v1171_v52 = vshll.u32 %v324_v44, 8  ;;  %v853_v58 = vmov 2475754826   ;;  %v854_v60 = vmov 2131351028  }
  0xa9   :  { %v429_v42 = vadd.s32 1, %v575_v45  ;;  %v855_v62 = vmov 2102212464   ;;  %v856_v1 = vmov 920167782   ;;  %vm318_vm13 = vcmp.lt.s32.totalorder %v1146_v23, 0 }
  0xaa   :  { %vm327_vm0 = vcmp.gt.s32.totalorder %v326_v43, 0  ;;  %v857_v14 = vmov 1326507024   ;;  %vm1236_vm15 = vcmp.le.f32.partialorder %v316_v28, 0.7853982 }
  0xab   :  { %v328_v22 = vsel %vm327_vm0, %v326_v43, 0  ;;  %vm430_vm1 = vcmp.gt.s32.totalorder %v429_v42, 0  ;;  %vm421_vm0 = vcmp.lt.s32.totalorder %v1149_v26, 0 }
  0xac   :  { %v330_v49 = vand.u32 31, %v328_v22  ;;  %v618_v50 = vpop.eup %617  ;;  %v329_v51 = vshrl.u32 %v328_v22, 5  ;;  %v431_v25 = vsel %vm430_vm1, %v429_v42, 0  ;;  %vm1252_vm1 = vcmp.le.f32.partialorder %v419_v34, 0.7853982 }
  0xad   :  { %v305_v54 = vmul.f32 %v618_v50, %v1097_v0  ;;  %v432_v38 = vshrl.u32 %v431_v25, 5  ;;  %v433_v43 = vand.u32 31, %v431_v25 }
  0xae   :  { %v331_v55 = vsub.s32 32, %v330_v49  ;;  %v333_v57 = vshll.u32 %v852_v56, %v330_v49  ;;  %v336_v59 = vshll.u32 %v853_v58, %v330_v49  ;;  %v339_v61 = vshll.u32 %v854_v60, %v330_v49 }
  0xaf   :  { %v342_v63 = vshll.u32 %v855_v62, %v330_v49  ;;  %v345_v5 = vshll.u32 %v856_v1, %v330_v49  ;;  %v308_v7 = vmul.f32 1.442695, %v305_v54  ;;  %vm348_vm2 = vcmp.lt.s32.totalorder %v329_v51, 1 }
  0xb0   :  { %v332_v8 = vshrl.u32 %v852_v56, %v331_v55  ;;  %v334_v12 = vshrl.u32 %v853_v58, %v331_v55  ;;  %v337_v11 = vshrl.u32 %v854_v60, %v331_v55  ;;  %v340_v13 = vshrl.u32 %v855_v62, %v331_v55 }
  0xb1   :  { %v343_v0 = vshrl.u32 %v856_v1, %v331_v55  ;;  %v346_v18 = vshrl.u32 %v857_v14, %v331_v55  ;;  %621 = vpow2.f32 %v308_v7  ;;  %vm349_vm3 = vcmp.lt.s32.totalorder %v329_v51, 2 }
  0xb2   :  { %v335_v19 = vor.u32 %v334_v12, %v333_v57  ;;  %v338_v15 = vor.u32 %v337_v11, %v336_v59  ;;  %v341_v21 = vor.u32 %v340_v13, %v339_v61  ;;  %vm350_vm4 = vcmp.lt.s32.totalorder %v329_v51, 3 }
  0xb3   :  { %v344_v16 = vor.u32 %v343_v0, %v342_v63  ;;  %v347_v24 = vor.u32 %v346_v18, %v345_v5  ;;  %vm351_vm5 = vcmp.lt.s32.totalorder %v329_v51, 4  ;;  %v434_v49 = vsub.s32 32, %v433_v43 }
  0xb4   :  { %v352_v29 = vsel %vm348_vm2, %v332_v8, %v335_v19  ;;  %v356_v30 = vsel %vm348_vm2, %v335_v19, %v338_v15  ;;  %v353_v31 = vsel %vm351_vm5, %v341_v21, 2102212464  ;;  %v360_v32 = vsel %vm348_vm2, %v338_v15, %v341_v21  ;;  %v620_v42 = vpop.eup %619 }
  0xb5   :  { %v357_v27 = vsel %vm351_vm5, %v344_v16, 920167782  ;;  %v361_v33 = vsel %vm351_vm5, %v347_v24, 1326507024  ;;  %v354_v35 = vsel %vm350_vm4, %v338_v15, %v353_v31  ;;  %v436_v50 = vshll.u32 %v852_v56, %v433_v43 }
  0xb6   :  { %v358_v36 = vsel %vm350_vm4, %v341_v21, %v357_v27  ;;  %v362_v37 = vsel %vm350_vm4, %v344_v16, %v361_v33  ;;  %v355_v39 = vsel %vm349_vm3, %v352_v29, %v354_v35  ;;  %v439_v54 = vshll.u32 %v853_v58, %v433_v43 }
  0xb7   :  { %v359_v40 = vsel %vm349_vm3, %v356_v30, %v358_v36  ;;  %v363_v41 = vsel %vm349_vm3, %v360_v32, %v362_v37  ;;  %v467_v55 = vshll.u32 %v427_v53, 8  ;;  %v371_v57 = vmul.u32 %v1171_v52, %v355_v39 }
  0xb8   :  { %v1182_v44 = vmul.u32.u64.low %v1171_v52, %v363_v41  ;;  %v1183_v45 = vmul.u32.u64.high %v1171_v52, %v363_v41, %v1182_v44  ;;  %v1186_v46 = vmul.u32.u64.low %v1171_v52, %v359_v40  ;;  %v1187_v22 = vmul.u32.u64.high %v1171_v52, %v359_v40, %v1186_v46 }
  0xb9   :  { %v442_v51 = vshll.u32 %v854_v60, %v433_v43  ;;  %v445_v59 = vshll.u32 %v855_v62, %v433_v43  ;;  %v448_v61 = vshll.u32 %v856_v1, %v433_v43  ;;  %v437_v63 = vshrl.u32 %v853_v58, %v434_v49 }
  0xba   :  { %v440_v5 = vshrl.u32 %v854_v60, %v434_v49  ;;  %v443_v7 = vshrl.u32 %v855_v62, %v434_v49  ;;  %vm451_vm6 = vcmp.lt.s32.totalorder %v432_v38, 1  ;;  %vm373_vm7 = vc.u32 %v1183_v45, %v1186_v46 }
  0xbb   :  { %v374_v8 = vadd.s32 1, %v1187_v22  ;;  %v435_v12 = vshrl.u32 %v852_v56, %v434_v49  ;;  %v446_v11 = vshrl.u32 %v856_v1, %v434_v49  ;;  %v438_v13 = vor.u32 %v437_v63, %v436_v50 }
  0xbc   :  { %v441_v0 = vor.u32 %v440_v5, %v439_v54  ;;  %v444_v53 = vor.u32 %v443_v7, %v442_v51  ;;  %v449_v18 = vshrl.u32 %v857_v14, %v434_v49  ;;  %v310_v52 = vmul.f32 %v620_v42, %v1167_v47 }
  0xbd   :  { %v375_v19 = vsel %vm373_vm7, %v374_v8, %v1187_v22  ;;  %v447_v58 = vor.u32 %v446_v11, %v445_v59  ;;  %vm453_vm8 = vcmp.lt.s32.totalorder %v432_v38, 3  ;;  %vm452_vm9 = vcmp.lt.s32.totalorder %v432_v38, 2 }
  0xbe   :  { %v622_v60 = vpop.eup %621  ;;  %v376_v62 = vadd.s32 %v375_v19, %v371_v57  ;;  %v450_v15 = vor.u32 %v449_v18, %v448_v61  ;;  %vm454_vm10 = vcmp.lt.s32.totalorder %v432_v38, 4  ;;  %v459_v56 = vsel %vm451_vm6, %v438_v13, %v441_v0 }
  0xbf   :  { %v311_v21 = vmul.f32 %v622_v60, %v1169_v48  ;;  %v456_v16 = vsel %vm454_vm10, %v444_v53, 2102212464  ;;  %v460_v1 = vsel %vm454_vm10, %v447_v58, 920167782  ;;  %v455_v14 = vsel %vm451_vm6, %v435_v12, %v438_v13 }
  0xc0   :  { %v377_v24 = vadd.s32 536870912, %v376_v62  ;;  %v461_v47 = vsel %vm453_vm8, %v444_v53, %v460_v1  ;;  %v463_v29 = vsel %vm451_vm6, %v441_v0, %v444_v53  ;;  %v457_v30 = vsel %vm453_vm8, %v441_v0, %v456_v16 }
  0xc1   :  { %v462_v25 = vsel %vm452_vm9, %v459_v56, %v461_v47  ;;  %v464_v31 = vsel %vm454_vm10, %v450_v15, 1326507024  ;;  %v1208_v48 = vmul.f32 %v310_v52, %v298_v17  ;;  %v1218_v37 = vmul.f32 %v311_v21, %v299_v20 }
  0xc2   :  { %v378_v27 = vshrl.u32 %v377_v24, 30  ;;  %v465_v32 = vsel %vm453_vm8, %v447_v58, %v464_v31  ;;  %v1211_v33 = vmul.u32.u64.low %v467_v55, %v462_v25  ;;  %v1212_v35 = vmul.u32.u64.high %v467_v55, %v462_v25, %v1211_v33 }
  0xc3   :  { %v466_v36 = vsel %vm452_vm9, %v463_v29, %v465_v32  ;;  %v458_v40 = vsel %vm452_vm9, %v455_v14, %v457_v30  ;;  %v372_v38 = vadd.s32 %v1186_v46, %v1183_v45  ;;  %vm408_vm5 = vweird.f32 %v1146_v23 }
  0xc4   :  { %v379_v39 = vshll.u32 %v378_v27, 30  ;;  %v1221_v41 = vmul.u32.u64.low %v467_v55, %v466_v36  ;;  %v1222_v2 = vmul.u32.u64.high %v467_v55, %v466_v36, %v1221_v41  ;;  %v477_v17 = vadd.s32 1, %v1212_v35 }
  0xc5   :  { %v474_v43 = vmul.u32 %v467_v55, %v458_v40  ;;  %v402_v56 = vsub.s32 4, %v378_v27  ;;  %vm511_vm9 = vweird.f32 %v1149_v26 }
  0xc6   :  { %v380_v9 = vsub.s32 %v376_v62, %v379_v39  ;;  %vm476_vm11 = vc.u32 %v1222_v2, %v1211_v33  ;;  %v475_v46 = vadd.s32 %v1211_v33, %v1222_v2 }
  0xc7   :  { %v478_v22 = vsel %vm476_vm11, %v477_v17, %v1212_v35  ;;  %v403_v29 = vsel %vm318_vm13, %v402_v56, %v378_v27 }
  0xc8   :  { %v382_v44 = vsub.s32 0, %v380_v9  ;;  %v479_v49 = vadd.s32 %v478_v22, %v474_v43  ;;  %v405_v32 = vsel %vm1236_vm15, 0, %v403_v29 }
  0xc9   :  { %v409_v35 = vand.u32 3, %v405_v32 }
  0xca   :  { %v572_v42 = vmin.u32 %v382_v44, %v380_v9  ;;  %v480_v10 = vadd.s32 536870912, %v479_v49 }
  0xcb   :  { %vm414_vm2 = vcmp.eq.s32.totalorder %v409_v35, 2  ;;  %vm411_vm3 = vcmp.eq.s32.totalorder %v409_v35, 0  ;;  %vm410_vm4 = vcmp.lt.s32.totalorder %v409_v35, 2 }
  0xcc   :  { %v384_v6 = vclz %v572_v42  ;;  %v1227_v50 = vshrl.u32 %v480_v10, 30 }
  0xce   :  { %v573_v20 = vadd.s32 4294967294, %v384_v6  ;;  %v482_v57 = vshll.u32 %v1227_v50, 30  ;;  %v505_v40 = vsub.s32 4, %v1227_v50 }
  0xd0   :  { %vm574_vm12 = vcmp.lt.s32.totalorder %v573_v20, 0  ;;  %v483_v61 = vsub.s32 %v479_v49, %v482_v57  ;;  %v506_v44 = vsel %vm421_vm0, %v505_v40, %v1227_v50 }
  0xd1   :  { %v387_v54 = vsel %vm574_vm12, 0, %v573_v20  ;;  %v508_v6 = vsel %vm1252_vm1, 0, %v506_v44 }
  0xd2   :  { %v388_v55 = vsub.s32 32, %v387_v54  ;;  %v389_v51 = vshll.u32 %v380_v9, %v387_v54  ;;  %v392_v59 = vsub.s32 4294967266, %v387_v54  ;;  %v485_v7 = vsub.s32 0, %v483_v61 }
  0xd3   :  { %v512_v20 = vand.u32 3, %v508_v6 }
  0xd4   :  { %v390_v63 = vshrl.u32 %v372_v38, %v388_v55  ;;  %v393_v5 = vadd.s32 127, %v392_v59  ;;  %v576_v11 = vmin.u32 %v485_v7, %v483_v61 }
  0xd5   :  { %vm517_vm6 = vcmp.eq.s32.totalorder %v512_v20, 2  ;;  %vm514_vm7 = vcmp.eq.s32.totalorder %v512_v20, 0  ;;  %vm513_vm8 = vcmp.lt.s32.totalorder %v512_v20, 2 }
  0xd6   :  { %v391_v8 = vor.u32 %v390_v63, %v389_v51  ;;  %v394_v12 = vshll.u32 %v393_v5, 23  ;;  %v487_v53 = vclz %v576_v11 }
  0xd8   :  { %v395_v13 = vor.u32 4788187, %v394_v12  ;;  %v398_v0 = vcvt.s32.f32 %v391_v8  ;;  %v577_v52 = vadd.s32 4294967294, %v487_v53 }
  0xda   :  { %v396_v18 = vand.u32 2147483647, %v395_v13  ;;  %vm578_vm14 = vcmp.lt.s32.totalorder %v577_v52, 0 }
  0xdb   :  { %v490_v60 = vsel %vm578_vm14, 0, %v577_v52 }
  0xdc   :  { %v399_v45 = vmul.f32 %v398_v0, %v396_v18  ;;  %v491_v62 = vsub.s32 32, %v490_v60  ;;  %v492_v15 = vshll.u32 %v483_v61, %v490_v60  ;;  %v495_v21 = vsub.s32 4294967266, %v490_v60 }
  0xde   :  { %v400_v58 = vxor.u32 2147483648, %v399_v45  ;;  %v493_v24 = vshrl.u32 %v475_v46, %v491_v62  ;;  %v496_v14 = vadd.s32 127, %v495_v21 }
  0xe0   :  { %v401_v16 = vsel %vm318_vm13, %v400_v58, %v399_v45  ;;  %v494_v28 = vor.u32 %v493_v24, %v492_v15  ;;  %v497_v47 = vshll.u32 %v496_v14, 23 }
  0xe1   :  { %v404_v1 = vsel %vm1236_vm15, %v1146_v23, %v401_v16 }
  0xe2   :  { %623 = vcosq.f32 %v404_v1  ;;  %v498_v30 = vor.u32 4788187, %v497_v47  ;;  %v501_v25 = vcvt.s32.f32 %v494_v28 }
  0xe3   :  { %625 = vsinq.f32 %v404_v1 }
  0xe4   :  { %v499_v31 = vand.u32 2147483647, %v498_v30 }
  0xe6   :  { %v502_v33 = vmul.f32 %v501_v25, %v499_v31 }
  0xe8   :  { %v503_v39 = vxor.u32 2147483648, %v502_v33 }
  0xea   :  { %v504_v27 = vsel %vm421_vm0, %v503_v39, %v502_v33 }
  0xeb   :  { %v507_v41 = vsel %vm1252_vm1, %v1149_v26, %v504_v27 }
  0xec   :  { %627 = vcosq.f32 %v507_v41 }
  0xed   :  { %629 = vsinq.f32 %v507_v41 }
  0xef   :  { %v624_v2 = vpop.eup %623 }
  0xf0   :  { %v626_v9 = vpop.eup %625  ;;  %v415_v17 = vxor.u32 2147483648, %v624_v2 }
  0xf1   :  { %v412_v34 = vxor.u32 2147483648, %v626_v9 }
  0xf2   :  { %v416_v43 = vsel %vm414_vm2, %v415_v17, %v626_v9 }
  0xf3   :  { %v413_v22 = vsel %vm411_vm3, %v624_v2, %v412_v34 }
  0xf4   :  { %v417_v42 = vsel %vm410_vm4, %v413_v22, %v416_v43 }
  0xf5   :  { %v418_v49 = vsel %vm408_vm5, nan, %v417_v42 }
  0xf6   :  { %v522_v10 = vmul.f32 %v418_v49, %v1105_v3 }
  0xf8   :  { %v526_v38 = vadd.f32 %v1208_v48, %v522_v10 }
  0xf9   :  { %v628_v54 = vpop.eup %627 }
  0xfa   :  { %528 = vst [vmem:[#allocation21] sm:$0xff] %v526_v38  ;;  %v630_v23 = vpop.eup %629  ;;  %v518_v57 = vxor.u32 2147483648, %v628_v54 }
  0xfb   :  { %v515_v55 = vxor.u32 2147483648, %v630_v23 }
  0xfc   :  { %v519_v50 = vsel %vm517_vm6, %v518_v57, %v630_v23 }
  0xfd   :  { %v516_v51 = vsel %vm514_vm7, %v628_v54, %v515_v55 }
  0xfe   :  { %v520_v59 = vsel %vm513_vm8, %v516_v51, %v519_v50 }
  0xff   :  { %v521_v61 = vsel %vm511_vm9, nan, %v520_v59 }
 0x100   :  { %v523_v3 = vmul.f32 %v521_v61, %v1109_v4 }
 0x102   :  { %v527_v48 = vadd.f32 %v1218_v37, %v523_v3 }
 0x104   :  { %529 = vst [vmem:[#allocation21 + $0x8] sm:$0xff] %v527_v48 }
 0x105   :  { %814 = shalt.err (!%p811_p3)
}
 0x106   :  { %541 = dma.vmem_to_hbm [thread:$0]  %s536_s19, 256, %s1290_s11, [#allocation4], %s841_s22, %s841_s22, %s842_s23  }
 0x107   :  { %837 = dma.done.wait [#allocation4], 256  }
 0x108   :  { %838 = vsyncadd [#allocation4], 4294967040 }
 0x109   :  { %545 = vsyncpa [#allocation3], 1 }
 0x10a   :  { %546 = vsyncpa [#allocation7], 1 }
 0x10b   :  { %547 = vsyncpa [#allocation10], 1 }
 0x10c   :  { %548 = vsyncpa [#allocation4], 1 }
 0x10d   :  { %549 = vsyncpa [#allocation5], 1 }
 0x10e   :  { %550 = vsyncpa [#allocation14], 1 }
 0x10f   :  { %551 = vsyncpa [#allocation17], 1 }
 0x110   :  { %552 = vsyncpa [#allocation20], 1 }

</bundles_post_ra>
